<compile_context>
chip_gen: v7x
topology: tpu7x:2x2x1
jax: 0.10.0
libtpu: 0.0.40
codegen_flags: <defaults>
</compile_context>

<pallas_src>
import math
import functools

import jax
import jax.numpy as jnp
from jax.experimental import pallas as pl
from jax.experimental.pallas import tpu as pltpu


def bridge_attn_kernel(x_ref, wq_ref, bq_ref, wk_ref, bk_ref, wv_ref, bv_ref,
                       wp_ref, bp_ref, y_ref,
                       q_sc, m_sc, l_sc, acc_sc,
                       *, n_head, t_kv, scale):
    # x_ref: (T, C) bf16 (leading batch dim squeezed by the BlockSpec)
    T, C = x_ref.shape
    Cp = y_ref.shape[-1]                       # lane-padded output width
    H = n_head
    hd = C // H
    kv = pl.program_id(1)
    nkv = pl.num_programs(1)

    # ---- per-sample init (kv == 0): Q projection + running softmax stats ----
    @pl.when(kv == 0)
    def _():
        x_all = x_ref[...]                                           # (T, C) bf16
        q = jnp.dot(x_all, wq_ref[...],
                    preferred_element_type=jnp.float32) + bq_ref[...]
        q_sc[...] = (q * scale).astype(jnp.bfloat16)                 # pre-scaled Q
        m_sc[...] = jnp.full(m_sc.shape, -1e30, jnp.float32)
        l_sc[...] = jnp.zeros(l_sc.shape, jnp.float32)
        acc_sc[...] = jnp.zeros(acc_sc.shape, jnp.float32)

    # ---- K / V projections for this KV tile only ----
    start = pl.multiple_of(kv * t_kv, t_kv)
    x_kv = x_ref[pl.ds(start, t_kv), :]                              # (t_kv, C) bf16
    k = jnp.dot(x_kv, wk_ref[...], preferred_element_type=jnp.float32) + bk_ref[...]
    v = jnp.dot(x_kv, wv_ref[...], preferred_element_type=jnp.float32) + bv_ref[...]
    kb = k.astype(jnp.bfloat16)
    vb = v.astype(jnp.bfloat16)

    # ---- causal mask for this tile, generated in-kernel (no HBM mask) ----
    row = jax.lax.broadcasted_iota(jnp.int32, (T, t_kv), 0)
    col = jax.lax.broadcasted_iota(jnp.int32, (T, t_kv), 1) + kv * t_kv
    allowed = row >= col                                             # (T, t_kv) bool

    qb = q_sc[...]                                                   # (T, C) bf16

    # ---- per-head online-softmax update (static unroll over heads) ----
    for h in range(H):
        sl = slice(h * hd, (h + 1) * hd)
        q_h = qb[:, sl]                                              # (T, hd)
        k_h = kb[:, sl]                                              # (t_kv, hd)
        v_h = vb[:, sl]                                              # (t_kv, hd)

        # scores: contract hd on both operands (no explicit transpose)
        s = jax.lax.dot_general(q_h, k_h, (((1,), (1,)), ((), ())),
                                preferred_element_type=jnp.float32)  # (T, t_kv)
        s = jnp.where(allowed, s, -1e30)

        m_prev = m_sc[h]                                             # (T, 1)
        m_new = jnp.maximum(m_prev, jnp.max(s, axis=-1, keepdims=True))
        alpha = jnp.exp(m_prev - m_new)
        p = jnp.exp(s - m_new)                                       # f32
        l_sc[h] = alpha * l_sc[h] + jnp.sum(p, axis=-1, keepdims=True)
        acc_sc[h] = alpha * acc_sc[h] + jnp.dot(
            p.astype(jnp.bfloat16), v_h, preferred_element_type=jnp.float32)
        m_sc[h] = m_new

    # ---- finalize: normalize + fused per-head output projection + bias ----
    @pl.when(kv == nkv - 1)
    def _():
        out = jnp.zeros((T, Cp), jnp.float32)
        for h in range(H):
            # exact division for the softmax denominator (parity with torch)
            o_h = (acc_sc[h] / l_sc[h]).astype(jnp.bfloat16)         # (T, hd)
            out = out + jnp.dot(o_h, wp_ref[h],
                                preferred_element_type=jnp.float32)  # accum on MXU
        out = out + bp_ref[...]      # resid_dropout: identity in eval mode
        y_ref[...] = out.astype(y_ref.dtype)                         # lane-dense store


def _vmem_bytes_estimate(T, C, Cp, H, hd, t_kv):
    weights = 3 * C * C * 2 + H * hd * Cp * 2 + 3 * C * 4 + Cp * 4
    x_blk = 2 * T * C * 2                 # double-buffered bf16 input block
    y_blk = 2 * T * Cp * 4                # double-buffered f32 output block
    scratch = T * C * 2 + 2 * H * T * 4 + H * T * hd * 4
    live = 4 * T * t_kv * 4 + 4 * T * C * 4   # scores/probs + projection temps
    return weights + x_blk + y_blk + scratch + live


def bridge_attention_forward(x, params, *, n_head, threshold):
    """Returns (y, bridge_activated, bridge_activations) like the nn.Module."""
    B, T, C = x.shape
    wq, bq, wk, bk, wv, bv, wp, bp, bridge_idx, wd, bd = params
    H = n_head
    assert C % H == 0
    hd = C // H
    Cp = ((C + 127) // 128) * 128          # lane-dense output width

    # KV tile: keep VMEM O(T * t_kv) for long sequences, single tile when small.
    if T % 256 == 0:
        t_kv = 256
    elif T % 128 == 0:
        t_kv = 128
    else:
        t_kv = T
    nkv = T // t_kv

    f32, bf16 = jnp.float32, jnp.bfloat16

    # Wrapper-side pre-arrangement (free XLA work, done once under jit).
    x_bf = x.astype(bf16)                                  # halves input DMA bytes
    wq_t = wq.T.astype(bf16)
    wk_t = wk.T.astype(bf16)
    wv_t = wv.T.astype(bf16)
    bq2 = bq.reshape(1, C).astype(f32)
    bk2 = bk.reshape(1, C).astype(f32)
    bv2 = bv.reshape(1, C).astype(f32)
    # Projection weight: (C_in, Cp) zero-padded, per-head layout (H, hd, Cp).
    wp_pad = jnp.pad(wp.T, ((0, 0), (0, Cp - C))).astype(bf16).reshape(H, hd, Cp)
    bp_pad = jnp.pad(bp, (0, Cp - C)).reshape(1, Cp).astype(f32)

    kernel = functools.partial(bridge_attn_kernel, n_head=H, t_kv=t_kv,
                               scale=1.0 / math.sqrt(hd))

    est = _vmem_bytes_estimate(T, C, Cp, H, hd, t_kv)
    vmem_limit = int(min(max(2 * est, 32 * 1024 * 1024), 64 * 1024 * 1024))

    y_pad = pl.pallas_call(
        kernel,
        out_shape=jax.ShapeDtypeStruct((B, T, Cp), f32),
        grid=(B, nkv),
        in_specs=[
            pl.BlockSpec((None, T, C), lambda b, kv: (b, 0, 0)),      # x (bf16)
            pl.BlockSpec((C, C), lambda b, kv: (0, 0)),               # Wq^T
            pl.BlockSpec((1, C), lambda b, kv: (0, 0)),               # bq
            pl.BlockSpec((C, C), lambda b, kv: (0, 0)),               # Wk^T
            pl.BlockSpec((1, C), lambda b, kv: (0, 0)),               # bk
            pl.BlockSpec((C, C), lambda b, kv: (0, 0)),               # Wv^T
            pl.BlockSpec((1, C), lambda b, kv: (0, 0)),               # bv
            pl.BlockSpec((H, hd, Cp), lambda b, kv: (0, 0, 0)),       # Wp per-head
            pl.BlockSpec((1, Cp), lambda b, kv: (0, 0)),              # bp (padded)
        ],
        out_specs=pl.BlockSpec((None, T, Cp), lambda b, kv: (b, 0, 0)),
        scratch_shapes=[
            pltpu.VMEM((T, C), bf16),          # cached pre-scaled Q
            pltpu.VMEM((H, T, 1), f32),        # running max
            pltpu.VMEM((H, T, 1), f32),        # running denom
            pltpu.VMEM((H, T, hd), f32),       # running output accumulator
        ],
        compiler_params=pltpu.CompilerParams(
            dimension_semantics=("parallel", "arbitrary"),
            vmem_limit_bytes=vmem_limit),
    )(x_bf, wq_t, bq2, wk_t, bk2, wv_t, bv2, wp_pad, bp_pad)

    y = y_pad[:, :, :C]                                    # (B, T, C)

    # Bridge-neuron gather + detector + sigmoid: tiny, kept in plain JAX.
    y_last = y[:, -1, :]                                   # (B, C)
    bridge_activations = jnp.take(y_last, bridge_idx, axis=1)   # (B, bridge_size)
    logit = bridge_activations @ wd.T + bd                 # (B, 1)
    bridge_signal = jax.nn.sigmoid(logit)
    bridge_activated = bridge_signal > threshold           # (B, 1) bool
    return y, bridge_activated, bridge_activations


def _linear_init(key, in_f, out_f):
    """Deterministic PyTorch-style Linear init: U(-1/sqrt(in), 1/sqrt(in))."""
    k_w, k_b = jax.random.split(key)
    bound = 1.0 / math.sqrt(in_f)
    w = jax.random.uniform(k_w, (out_f, in_f), jnp.float32, -bound, bound)
    b = jax.random.uniform(k_b, (out_f,), jnp.float32, -bound, bound)
    return w, b


if __name__ == "__main__":
    # Small config consistent with the module (block_size = T).
    B, T, C, n_head = 2, 8, 32, 4
    bridge_neurons_pct = 0.25
    bridge_activation_threshold = 0.5
    bridge_size = int(bridge_neurons_pct * C)   # 8

    key = jax.random.PRNGKey(0)
    kx, kq, kk, kv, kp, kidx, kd = jax.random.split(key, 7)

    x = jax.random.normal(kx, (B, T, C), dtype=jnp.float32)

    wq, bq = _linear_init(kq, C, C)
    wk, bk = _linear_init(kk, C, C)
    wv, bv = _linear_init(kv, C, C)
    wp, bp = _linear_init(kp, C, C)
    wd, bd = _linear_init(kd, bridge_size, 1)

    # torch.randperm(n_embd)[:bridge_size] analogue (deterministic).
    bridge_idx = jax.random.permutation(kidx, C)[:bridge_size].astype(jnp.int32)

    params = (wq, bq, wk, bk, wv, bv, wp, bp, bridge_idx, wd, bd)

    fwd = jax.jit(functools.partial(
        bridge_attention_forward, n_head=n_head,
        threshold=bridge_activation_threshold))

    y, bridge_activated, bridge_activations = fwd(x, params)
    jax.block_until_ready((y, bridge_activated, bridge_activations))

    assert y.shape == (B, T, C)
    assert bridge_activated.shape == (B, 1) and bridge_activated.dtype == jnp.bool_
    assert bridge_activations.shape == (B, bridge_size)
    assert bool(jnp.all(jnp.isfinite(y)))

    print("KERNEL_OK")
</pallas_src>

<mosaic_0001>
module attributes {stable_mosaic.version = 11 : i64} {
  func.func @bridge_attn_kernel(%arg0: i32, %arg1: i32, %arg2: memref<1x8x32xbf16, #tpu.memory_space<vmem>>, %arg3: memref<32x32xbf16, #tpu.memory_space<vmem>>, %arg4: memref<1x32xf32, #tpu.memory_space<vmem>>, %arg5: memref<32x32xbf16, #tpu.memory_space<vmem>>, %arg6: memref<1x32xf32, #tpu.memory_space<vmem>>, %arg7: memref<32x32xbf16, #tpu.memory_space<vmem>>, %arg8: memref<1x32xf32, #tpu.memory_space<vmem>>, %arg9: memref<4x8x128xbf16, #tpu.memory_space<vmem>>, %arg10: memref<1x128xf32, #tpu.memory_space<vmem>>, %arg11: memref<1x8x128xf32, #tpu.memory_space<vmem>>, %arg12: memref<8x32xbf16, #tpu.memory_space<vmem>>, %arg13: memref<4x8x1xf32, #tpu.memory_space<vmem>>, %arg14: memref<4x8x1xf32, #tpu.memory_space<vmem>>, %arg15: memref<4x8x8xf32, #tpu.memory_space<vmem>>) attributes {dimension_semantics = [#tpu.dimension_semantics<parallel>, #tpu.dimension_semantics<arbitrary>], iteration_bounds = array<i64: 2, 1>, scalar_prefetch = 0 : i64, scratch_operands = 4 : i64, tpu.core_type = #tpu.core_type<tc>, window_params = [{transform_indices = @transform_0, window_bounds = array<i64: 1, 8, 32>}, {pipeline_mode = #tpu.pipeline_mode<synchronous>, transform_indices = @transform_1, window_bounds = array<i64: 32, 32>}, {pipeline_mode = #tpu.pipeline_mode<synchronous>, transform_indices = @transform_2, window_bounds = array<i64: 1, 32>}, {pipeline_mode = #tpu.pipeline_mode<synchronous>, transform_indices = @transform_3, window_bounds = array<i64: 32, 32>}, {pipeline_mode = #tpu.pipeline_mode<synchronous>, transform_indices = @transform_4, window_bounds = array<i64: 1, 32>}, {pipeline_mode = #tpu.pipeline_mode<synchronous>, transform_indices = @transform_5, window_bounds = array<i64: 32, 32>}, {pipeline_mode = #tpu.pipeline_mode<synchronous>, transform_indices = @transform_6, window_bounds = array<i64: 1, 32>}, {pipeline_mode = #tpu.pipeline_mode<synchronous>, transform_indices = @transform_7, window_bounds = array<i64: 4, 8, 128>}, {pipeline_mode = #tpu.pipeline_mode<synchronous>, transform_indices = @transform_8, window_bounds = array<i64: 1, 128>}, {transform_indices = @transform_9, window_bounds = array<i64: 1, 8, 128>}]} {
    %c0_i32 = arith.constant 0 : i32
    %0 = arith.cmpi eq, %arg1, %c0_i32 : i32
    %1 = arith.extui %0 : i1 to i32
    %c0_i32_0 = arith.constant 0 : i32
    %2 = arith.cmpi ne, %1, %c0_i32_0 : i32
    scf.if %2 {
      %c0_105 = arith.constant 0 : index
      %c0_106 = arith.constant 0 : index
      %c0_107 = arith.constant 0 : index
      %182 = vector.load %arg2[%c0_105, %c0_106, %c0_107] : memref<1x8x32xbf16, #tpu.memory_space<vmem>>, vector<1x8x32xbf16>
      %183 = vector.shape_cast %182 : vector<1x8x32xbf16> to vector<8x32xbf16>
      %c0_108 = arith.constant 0 : index
      %c0_109 = arith.constant 0 : index
      %184 = vector.load %arg3[%c0_108, %c0_109] : memref<32x32xbf16, #tpu.memory_space<vmem>>, vector<32x32xbf16>
      %cst_110 = arith.constant dense<0.000000e+00> : vector<8x32xf32>
      %185 = tpu.matmul %183, %184, %cst_110 {dimension_numbers = #tpu.dot_dimension_numbers<[1], [0], [0], [1], [0, 0, 1, 1], [], []>} : vector<8x32xbf16>, vector<32x32xbf16>, vector<8x32xf32> -> vector<8x32xf32>
      %c0_111 = arith.constant 0 : index
      %c0_112 = arith.constant 0 : index
      %186 = vector.load %arg4[%c0_111, %c0_112] : memref<1x32xf32, #tpu.memory_space<vmem>>, vector<1x32xf32>
      %187 = vector.broadcast %186 : vector<1x32xf32> to vector<8x32xf32>
      %188 = arith.addf %185, %187 : vector<8x32xf32>
      %cst_113 = arith.constant 0.353553385 : f32
      %189 = vector.broadcast %cst_113 : f32 to vector<8x32xf32>
      %190 = arith.mulf %188, %189 : vector<8x32xf32>
      %191 = arith.truncf %190 : vector<8x32xf32> to vector<8x32xbf16>
      %c0_114 = arith.constant 0 : index
      %c0_115 = arith.constant 0 : index
      %192 = vector.load %arg12[%c0_114, %c0_115] : memref<8x32xbf16, #tpu.memory_space<vmem>>, vector<8x32xbf16>
      tpu.vector_store %arg12[%c0_114, %c0_115], %191 {strides = array<i32>} : memref<8x32xbf16, #tpu.memory_space<vmem>>, vector<8x32xbf16>,
      %cst_116 = arith.constant -1.000000e+30 : f32
      %193 = vector.broadcast %cst_116 : f32 to vector<4x8x1xf32>
      %c0_117 = arith.constant 0 : index
      %c0_118 = arith.constant 0 : index
      %c0_119 = arith.constant 0 : index
      %194 = vector.load %arg13[%c0_117, %c0_118, %c0_119] : memref<4x8x1xf32, #tpu.memory_space<vmem>>, vector<4x8x1xf32>
      tpu.vector_store %arg13[%c0_117, %c0_118, %c0_119], %193 {strides = array<i32>} : memref<4x8x1xf32, #tpu.memory_space<vmem>>, vector<4x8x1xf32>,
      %cst_120 = arith.constant 0.000000e+00 : f32
      %195 = vector.broadcast %cst_120 : f32 to vector<4x8x1xf32>
      %c0_121 = arith.constant 0 : index
      %c0_122 = arith.constant 0 : index
      %c0_123 = arith.constant 0 : index
      %196 = vector.load %arg14[%c0_121, %c0_122, %c0_123] : memref<4x8x1xf32, #tpu.memory_space<vmem>>, vector<4x8x1xf32>
      tpu.vector_store %arg14[%c0_121, %c0_122, %c0_123], %195 {strides = array<i32>} : memref<4x8x1xf32, #tpu.memory_space<vmem>>, vector<4x8x1xf32>,
      %cst_124 = arith.constant 0.000000e+00 : f32
      %197 = vector.broadcast %cst_124 : f32 to vector<4x8x8xf32>
      %c0_125 = arith.constant 0 : index
      %c0_126 = arith.constant 0 : index
      %c0_127 = arith.constant 0 : index
      %198 = vector.load %arg15[%c0_125, %c0_126, %c0_127] : memref<4x8x8xf32, #tpu.memory_space<vmem>>, vector<4x8x8xf32>
      tpu.vector_store %arg15[%c0_125, %c0_126, %c0_127], %197 {strides = array<i32>} : memref<4x8x8xf32, #tpu.memory_space<vmem>>, vector<4x8x8xf32>,
    } else {
    }
    %c8_i32 = arith.constant 8 : i32
    %3 = arith.muli %arg1, %c8_i32 : i32
    %4 = tpu.assume_multiple %3, 8 : i32
    %c0 = arith.constant 0 : index
    %5 = arith.index_cast %4 : i32 to index
    %c0_1 = arith.constant 0 : index
    %6 = vector.load %arg2[%c0, %5, %c0_1] : memref<1x8x32xbf16, #tpu.memory_space<vmem>>, vector<1x8x32xbf16>
    %7 = vector.shape_cast %6 : vector<1x8x32xbf16> to vector<8x32xbf16>
    %c0_2 = arith.constant 0 : index
    %c0_3 = arith.constant 0 : index
    %8 = vector.load %arg5[%c0_2, %c0_3] : memref<32x32xbf16, #tpu.memory_space<vmem>>, vector<32x32xbf16>
    %cst = arith.constant dense<0.000000e+00> : vector<8x32xf32>
    %9 = tpu.matmul %7, %8, %cst {dimension_numbers = #tpu.dot_dimension_numbers<[1], [0], [0], [1], [0, 0, 1, 1], [], []>} : vector<8x32xbf16>, vector<32x32xbf16>, vector<8x32xf32> -> vector<8x32xf32>
    %c0_4 = arith.constant 0 : index
    %c0_5 = arith.constant 0 : index
    %10 = vector.load %arg6[%c0_4, %c0_5] : memref<1x32xf32, #tpu.memory_space<vmem>>, vector<1x32xf32>
    %11 = vector.broadcast %10 : vector<1x32xf32> to vector<8x32xf32>
    %12 = arith.addf %9, %11 : vector<8x32xf32>
    %c0_6 = arith.constant 0 : index
    %c0_7 = arith.constant 0 : index
    %13 = vector.load %arg7[%c0_6, %c0_7] : memref<32x32xbf16, #tpu.memory_space<vmem>>, vector<32x32xbf16>
    %cst_8 = arith.constant dense<0.000000e+00> : vector<8x32xf32>
    %14 = tpu.matmul %7, %13, %cst_8 {dimension_numbers = #tpu.dot_dimension_numbers<[1], [0], [0], [1], [0, 0, 1, 1], [], []>} : vector<8x32xbf16>, vector<32x32xbf16>, vector<8x32xf32> -> vector<8x32xf32>
    %c0_9 = arith.constant 0 : index
    %c0_10 = arith.constant 0 : index
    %15 = vector.load %arg8[%c0_9, %c0_10] : memref<1x32xf32, #tpu.memory_space<vmem>>, vector<1x32xf32>
    %16 = vector.broadcast %15 : vector<1x32xf32> to vector<8x32xf32>
    %17 = arith.addf %14, %16 : vector<8x32xf32>
    %18 = arith.truncf %12 : vector<8x32xf32> to vector<8x32xbf16>
    %19 = arith.truncf %17 : vector<8x32xf32> to vector<8x32xbf16>
    %20 = tpu.iota {dimensions = array<i32: 0>} : vector<8x8xi32>
    %21 = tpu.iota {dimensions = array<i32: 1>} : vector<8x8xi32>
    %c8_i32_11 = arith.constant 8 : i32
    %22 = arith.muli %arg1, %c8_i32_11 : i32
    %23 = vector.broadcast %22 : i32 to vector<8x8xi32>
    %24 = arith.addi %21, %23 : vector<8x8xi32>
    %25 = arith.cmpi sge, %20, %24 : vector<8x8xi32>
    %c0_12 = arith.constant 0 : index
    %c0_13 = arith.constant 0 : index
    %26 = vector.load %arg12[%c0_12, %c0_13] : memref<8x32xbf16, #tpu.memory_space<vmem>>, vector<8x32xbf16>
    %27 = vector.extract_strided_slice %26 {offsets = [0, 0], sizes = [8, 8], strides = [1, 1]} : vector<8x32xbf16> to vector<8x8xbf16>
    %28 = vector.extract_strided_slice %18 {offsets = [0, 0], sizes = [8, 8], strides = [1, 1]} : vector<8x32xbf16> to vector<8x8xbf16>
    %29 = vector.extract_strided_slice %19 {offsets = [0, 0], sizes = [8, 8], strides = [1, 1]} : vector<8x32xbf16> to vector<8x8xbf16>
    %cst_14 = arith.constant dense<0.000000e+00> : vector<8x8xf32>
    %30 = tpu.matmul %27, %28, %cst_14 {dimension_numbers = #tpu.dot_dimension_numbers<[1], [1], [0], [0], [0, 0, 1, 0], [], []>} : vector<8x8xbf16>, vector<8x8xbf16>, vector<8x8xf32> -> vector<8x8xf32>
    %cst_15 = arith.constant -1.000000e+30 : f32
    %31 = vector.broadcast %cst_15 : f32 to vector<8x8xf32>
    %32 = arith.select %25, %30, %31 : vector<8x8xi1>, vector<8x8xf32>
    %c0_16 = arith.constant 0 : index
    %c0_17 = arith.constant 0 : index
    %c0_18 = arith.constant 0 : index
    %33 = vector.load %arg13[%c0_16, %c0_17, %c0_18] : memref<4x8x1xf32, #tpu.memory_space<vmem>>, vector<1x8x1xf32>
    %34 = vector.shape_cast %33 : vector<1x8x1xf32> to vector<8x1xf32>
    %cst_19 = arith.constant dense<0xFF800000> : vector<8xf32>
    %35 = vector.multi_reduction <maximumf>, %32, %cst_19 [1] : vector<8x8xf32> to vector<8xf32>
    %36 = vector.shape_cast %35 : vector<8xf32> to vector<8x1xf32>
    %37 = arith.maximumf %34, %36 : vector<8x1xf32>
    %38 = arith.subf %34, %37 : vector<8x1xf32>
    %39 = math.exp %38 : vector<8x1xf32>
    %40 = vector.broadcast %37 : vector<8x1xf32> to vector<8x8xf32>
    %41 = arith.subf %32, %40 : vector<8x8xf32>
    %42 = math.exp %41 : vector<8x8xf32>
    %c0_20 = arith.constant 0 : index
    %c0_21 = arith.constant 0 : index
    %c0_22 = arith.constant 0 : index
    %43 = vector.load %arg14[%c0_20, %c0_21, %c0_22] : memref<4x8x1xf32, #tpu.memory_space<vmem>>, vector<1x8x1xf32>
    %44 = vector.shape_cast %43 : vector<1x8x1xf32> to vector<8x1xf32>
    %45 = arith.mulf %39, %44 : vector<8x1xf32>
    %cst_23 = arith.constant dense<0.000000e+00> : vector<8xf32>
    %46 = vector.multi_reduction <add>, %42, %cst_23 [1] : vector<8x8xf32> to vector<8xf32>
    %47 = vector.shape_cast %46 : vector<8xf32> to vector<8x1xf32>
    %48 = arith.addf %45, %47 : vector<8x1xf32>
    %c0_24 = arith.constant 0 : index
    %c0_25 = arith.constant 0 : index
    %c0_26 = arith.constant 0 : index
    %49 = vector.load %arg14[%c0_24, %c0_25, %c0_26] : memref<4x8x1xf32, #tpu.memory_space<vmem>>, vector<1x8x1xf32>
    %50 = vector.shape_cast %49 : vector<1x8x1xf32> to vector<8x1xf32>
    %51 = vector.shape_cast %48 : vector<8x1xf32> to vector<1x8x1xf32>
    tpu.vector_store %arg14[%c0_24, %c0_25, %c0_26], %51 {strides = array<i32>} : memref<4x8x1xf32, #tpu.memory_space<vmem>>, vector<1x8x1xf32>,
    %c0_27 = arith.constant 0 : index
    %c0_28 = arith.constant 0 : index
    %c0_29 = arith.constant 0 : index
    %52 = vector.load %arg15[%c0_27, %c0_28, %c0_29] : memref<4x8x8xf32, #tpu.memory_space<vmem>>, vector<1x8x8xf32>
    %53 = vector.shape_cast %52 : vector<1x8x8xf32> to vector<8x8xf32>
    %54 = vector.broadcast %39 : vector<8x1xf32> to vector<8x8xf32>
    %55 = arith.mulf %54, %53 : vector<8x8xf32>
    %56 = arith.truncf %42 : vector<8x8xf32> to vector<8x8xbf16>
    %cst_30 = arith.constant dense<0.000000e+00> : vector<8x8xf32>
    %57 = tpu.matmul %56, %29, %cst_30 {dimension_numbers = #tpu.dot_dimension_numbers<[1], [0], [0], [1], [0, 0, 1, 1], [], []>} : vector<8x8xbf16>, vector<8x8xbf16>, vector<8x8xf32> -> vector<8x8xf32>
    %58 = arith.addf %55, %57 : vector<8x8xf32>
    %c0_31 = arith.constant 0 : index
    %c0_32 = arith.constant 0 : index
    %c0_33 = arith.constant 0 : index
    %59 = vector.load %arg15[%c0_31, %c0_32, %c0_33] : memref<4x8x8xf32, #tpu.memory_space<vmem>>, vector<1x8x8xf32>
    %60 = vector.shape_cast %59 : vector<1x8x8xf32> to vector<8x8xf32>
    %61 = vector.shape_cast %58 : vector<8x8xf32> to vector<1x8x8xf32>
    tpu.vector_store %arg15[%c0_31, %c0_32, %c0_33], %61 {strides = array<i32>} : memref<4x8x8xf32, #tpu.memory_space<vmem>>, vector<1x8x8xf32>,
    %c0_34 = arith.constant 0 : index
    %c0_35 = arith.constant 0 : index
    %c0_36 = arith.constant 0 : index
    %62 = vector.load %arg13[%c0_34, %c0_35, %c0_36] : memref<4x8x1xf32, #tpu.memory_space<vmem>>, vector<1x8x1xf32>
    %63 = vector.shape_cast %62 : vector<1x8x1xf32> to vector<8x1xf32>
    %64 = vector.shape_cast %37 : vector<8x1xf32> to vector<1x8x1xf32>
    tpu.vector_store %arg13[%c0_34, %c0_35, %c0_36], %64 {strides = array<i32>} : memref<4x8x1xf32, #tpu.memory_space<vmem>>, vector<1x8x1xf32>,
    %65 = vector.extract_strided_slice %26 {offsets = [0, 8], sizes = [8, 8], strides = [1, 1]} : vector<8x32xbf16> to vector<8x8xbf16>
    %66 = vector.extract_strided_slice %18 {offsets = [0, 8], sizes = [8, 8], strides = [1, 1]} : vector<8x32xbf16> to vector<8x8xbf16>
    %67 = vector.extract_strided_slice %19 {offsets = [0, 8], sizes = [8, 8], strides = [1, 1]} : vector<8x32xbf16> to vector<8x8xbf16>
    %cst_37 = arith.constant dense<0.000000e+00> : vector<8x8xf32>
    %68 = tpu.matmul %65, %66, %cst_37 {dimension_numbers = #tpu.dot_dimension_numbers<[1], [1], [0], [0], [0, 0, 1, 0], [], []>} : vector<8x8xbf16>, vector<8x8xbf16>, vector<8x8xf32> -> vector<8x8xf32>
    %cst_38 = arith.constant -1.000000e+30 : f32
    %69 = vector.broadcast %cst_38 : f32 to vector<8x8xf32>
    %70 = arith.select %25, %68, %69 : vector<8x8xi1>, vector<8x8xf32>
    %c1 = arith.constant 1 : index
    %c0_39 = arith.constant 0 : index
    %c0_40 = arith.constant 0 : index
    %71 = vector.load %arg13[%c1, %c0_39, %c0_40] : memref<4x8x1xf32, #tpu.memory_space<vmem>>, vector<1x8x1xf32>
    %72 = vector.shape_cast %71 : vector<1x8x1xf32> to vector<8x1xf32>
    %cst_41 = arith.constant dense<0xFF800000> : vector<8xf32>
    %73 = vector.multi_reduction <maximumf>, %70, %cst_41 [1] : vector<8x8xf32> to vector<8xf32>
    %74 = vector.shape_cast %73 : vector<8xf32> to vector<8x1xf32>
    %75 = arith.maximumf %72, %74 : vector<8x1xf32>
    %76 = arith.subf %72, %75 : vector<8x1xf32>
    %77 = math.exp %76 : vector<8x1xf32>
    %78 = vector.broadcast %75 : vector<8x1xf32> to vector<8x8xf32>
    %79 = arith.subf %70, %78 : vector<8x8xf32>
    %80 = math.exp %79 : vector<8x8xf32>
    %c1_42 = arith.constant 1 : index
    %c0_43 = arith.constant 0 : index
    %c0_44 = arith.constant 0 : index
    %81 = vector.load %arg14[%c1_42, %c0_43, %c0_44] : memref<4x8x1xf32, #tpu.memory_space<vmem>>, vector<1x8x1xf32>
    %82 = vector.shape_cast %81 : vector<1x8x1xf32> to vector<8x1xf32>
    %83 = arith.mulf %77, %82 : vector<8x1xf32>
    %cst_45 = arith.constant dense<0.000000e+00> : vector<8xf32>
    %84 = vector.multi_reduction <add>, %80, %cst_45 [1] : vector<8x8xf32> to vector<8xf32>
    %85 = vector.shape_cast %84 : vector<8xf32> to vector<8x1xf32>
    %86 = arith.addf %83, %85 : vector<8x1xf32>
    %c1_46 = arith.constant 1 : index
    %c0_47 = arith.constant 0 : index
    %c0_48 = arith.constant 0 : index
    %87 = vector.load %arg14[%c1_46, %c0_47, %c0_48] : memref<4x8x1xf32, #tpu.memory_space<vmem>>, vector<1x8x1xf32>
    %88 = vector.shape_cast %87 : vector<1x8x1xf32> to vector<8x1xf32>
    %89 = vector.shape_cast %86 : vector<8x1xf32> to vector<1x8x1xf32>
    tpu.vector_store %arg14[%c1_46, %c0_47, %c0_48], %89 {strides = array<i32>} : memref<4x8x1xf32, #tpu.memory_space<vmem>>, vector<1x8x1xf32>,
    %c1_49 = arith.constant 1 : index
    %c0_50 = arith.constant 0 : index
    %c0_51 = arith.constant 0 : index
    %90 = vector.load %arg15[%c1_49, %c0_50, %c0_51] : memref<4x8x8xf32, #tpu.memory_space<vmem>>, vector<1x8x8xf32>
    %91 = vector.shape_cast %90 : vector<1x8x8xf32> to vector<8x8xf32>
    %92 = vector.broadcast %77 : vector<8x1xf32> to vector<8x8xf32>
    %93 = arith.mulf %92, %91 : vector<8x8xf32>
    %94 = arith.truncf %80 : vector<8x8xf32> to vector<8x8xbf16>
    %cst_52 = arith.constant dense<0.000000e+00> : vector<8x8xf32>
    %95 = tpu.matmul %94, %67, %cst_52 {dimension_numbers = #tpu.dot_dimension_numbers<[1], [0], [0], [1], [0, 0, 1, 1], [], []>} : vector<8x8xbf16>, vector<8x8xbf16>, vector<8x8xf32> -> vector<8x8xf32>
    %96 = arith.addf %93, %95 : vector<8x8xf32>
    %c1_53 = arith.constant 1 : index
    %c0_54 = arith.constant 0 : index
    %c0_55 = arith.constant 0 : index
    %97 = vector.load %arg15[%c1_53, %c0_54, %c0_55] : memref<4x8x8xf32, #tpu.memory_space<vmem>>, vector<1x8x8xf32>
    %98 = vector.shape_cast %97 : vector<1x8x8xf32> to vector<8x8xf32>
    %99 = vector.shape_cast %96 : vector<8x8xf32> to vector<1x8x8xf32>
    tpu.vector_store %arg15[%c1_53, %c0_54, %c0_55], %99 {strides = array<i32>} : memref<4x8x8xf32, #tpu.memory_space<vmem>>, vector<1x8x8xf32>,
    %c1_56 = arith.constant 1 : index
    %c0_57 = arith.constant 0 : index
    %c0_58 = arith.constant 0 : index
    %100 = vector.load %arg13[%c1_56, %c0_57, %c0_58] : memref<4x8x1xf32, #tpu.memory_space<vmem>>, vector<1x8x1xf32>
    %101 = vector.shape_cast %100 : vector<1x8x1xf32> to vector<8x1xf32>
    %102 = vector.shape_cast %75 : vector<8x1xf32> to vector<1x8x1xf32>
    tpu.vector_store %arg13[%c1_56, %c0_57, %c0_58], %102 {strides = array<i32>} : memref<4x8x1xf32, #tpu.memory_space<vmem>>, vector<1x8x1xf32>,
    %103 = vector.extract_strided_slice %26 {offsets = [0, 16], sizes = [8, 8], strides = [1, 1]} : vector<8x32xbf16> to vector<8x8xbf16>
    %104 = vector.extract_strided_slice %18 {offsets = [0, 16], sizes = [8, 8], strides = [1, 1]} : vector<8x32xbf16> to vector<8x8xbf16>
    %105 = vector.extract_strided_slice %19 {offsets = [0, 16], sizes = [8, 8], strides = [1, 1]} : vector<8x32xbf16> to vector<8x8xbf16>
    %cst_59 = arith.constant dense<0.000000e+00> : vector<8x8xf32>
    %106 = tpu.matmul %103, %104, %cst_59 {dimension_numbers = #tpu.dot_dimension_numbers<[1], [1], [0], [0], [0, 0, 1, 0], [], []>} : vector<8x8xbf16>, vector<8x8xbf16>, vector<8x8xf32> -> vector<8x8xf32>
    %cst_60 = arith.constant -1.000000e+30 : f32
    %107 = vector.broadcast %cst_60 : f32 to vector<8x8xf32>
    %108 = arith.select %25, %106, %107 : vector<8x8xi1>, vector<8x8xf32>
    %c2 = arith.constant 2 : index
    %c0_61 = arith.constant 0 : index
    %c0_62 = arith.constant 0 : index
    %109 = vector.load %arg13[%c2, %c0_61, %c0_62] : memref<4x8x1xf32, #tpu.memory_space<vmem>>, vector<1x8x1xf32>
    %110 = vector.shape_cast %109 : vector<1x8x1xf32> to vector<8x1xf32>
    %cst_63 = arith.constant dense<0xFF800000> : vector<8xf32>
    %111 = vector.multi_reduction <maximumf>, %108, %cst_63 [1] : vector<8x8xf32> to vector<8xf32>
    %112 = vector.shape_cast %111 : vector<8xf32> to vector<8x1xf32>
    %113 = arith.maximumf %110, %112 : vector<8x1xf32>
    %114 = arith.subf %110, %113 : vector<8x1xf32>
    %115 = math.exp %114 : vector<8x1xf32>
    %116 = vector.broadcast %113 : vector<8x1xf32> to vector<8x8xf32>
    %117 = arith.subf %108, %116 : vector<8x8xf32>
    %118 = math.exp %117 : vector<8x8xf32>
    %c2_64 = arith.constant 2 : index
    %c0_65 = arith.constant 0 : index
    %c0_66 = arith.constant 0 : index
    %119 = vector.load %arg14[%c2_64, %c0_65, %c0_66] : memref<4x8x1xf32, #tpu.memory_space<vmem>>, vector<1x8x1xf32>
    %120 = vector.shape_cast %119 : vector<1x8x1xf32> to vector<8x1xf32>
    %121 = arith.mulf %115, %120 : vector<8x1xf32>
    %cst_67 = arith.constant dense<0.000000e+00> : vector<8xf32>
    %122 = vector.multi_reduction <add>, %118, %cst_67 [1] : vector<8x8xf32> to vector<8xf32>
    %123 = vector.shape_cast %122 : vector<8xf32> to vector<8x1xf32>
    %124 = arith.addf %121, %123 : vector<8x1xf32>
    %c2_68 = arith.constant 2 : index
    %c0_69 = arith.constant 0 : index
    %c0_70 = arith.constant 0 : index
    %125 = vector.load %arg14[%c2_68, %c0_69, %c0_70] : memref<4x8x1xf32, #tpu.memory_space<vmem>>, vector<1x8x1xf32>
    %126 = vector.shape_cast %125 : vector<1x8x1xf32> to vector<8x1xf32>
    %127 = vector.shape_cast %124 : vector<8x1xf32> to vector<1x8x1xf32>
    tpu.vector_store %arg14[%c2_68, %c0_69, %c0_70], %127 {strides = array<i32>} : memref<4x8x1xf32, #tpu.memory_space<vmem>>, vector<1x8x1xf32>,
    %c2_71 = arith.constant 2 : index
    %c0_72 = arith.constant 0 : index
    %c0_73 = arith.constant 0 : index
    %128 = vector.load %arg15[%c2_71, %c0_72, %c0_73] : memref<4x8x8xf32, #tpu.memory_space<vmem>>, vector<1x8x8xf32>
    %129 = vector.shape_cast %128 : vector<1x8x8xf32> to vector<8x8xf32>
    %130 = vector.broadcast %115 : vector<8x1xf32> to vector<8x8xf32>
    %131 = arith.mulf %130, %129 : vector<8x8xf32>
    %132 = arith.truncf %118 : vector<8x8xf32> to vector<8x8xbf16>
    %cst_74 = arith.constant dense<0.000000e+00> : vector<8x8xf32>
    %133 = tpu.matmul %132, %105, %cst_74 {dimension_numbers = #tpu.dot_dimension_numbers<[1], [0], [0], [1], [0, 0, 1, 1], [], []>} : vector<8x8xbf16>, vector<8x8xbf16>, vector<8x8xf32> -> vector<8x8xf32>
    %134 = arith.addf %131, %133 : vector<8x8xf32>
    %c2_75 = arith.constant 2 : index
    %c0_76 = arith.constant 0 : index
    %c0_77 = arith.constant 0 : index
    %135 = vector.load %arg15[%c2_75, %c0_76, %c0_77] : memref<4x8x8xf32, #tpu.memory_space<vmem>>, vector<1x8x8xf32>
    %136 = vector.shape_cast %135 : vector<1x8x8xf32> to vector<8x8xf32>
    %137 = vector.shape_cast %134 : vector<8x8xf32> to vector<1x8x8xf32>
    tpu.vector_store %arg15[%c2_75, %c0_76, %c0_77], %137 {strides = array<i32>} : memref<4x8x8xf32, #tpu.memory_space<vmem>>, vector<1x8x8xf32>,
    %c2_78 = arith.constant 2 : index
    %c0_79 = arith.constant 0 : index
    %c0_80 = arith.constant 0 : index
    %138 = vector.load %arg13[%c2_78, %c0_79, %c0_80] : memref<4x8x1xf32, #tpu.memory_space<vmem>>, vector<1x8x1xf32>
    %139 = vector.shape_cast %138 : vector<1x8x1xf32> to vector<8x1xf32>
    %140 = vector.shape_cast %113 : vector<8x1xf32> to vector<1x8x1xf32>
    tpu.vector_store %arg13[%c2_78, %c0_79, %c0_80], %140 {strides = array<i32>} : memref<4x8x1xf32, #tpu.memory_space<vmem>>, vector<1x8x1xf32>,
    %141 = vector.extract_strided_slice %26 {offsets = [0, 24], sizes = [8, 8], strides = [1, 1]} : vector<8x32xbf16> to vector<8x8xbf16>
    %142 = vector.extract_strided_slice %18 {offsets = [0, 24], sizes = [8, 8], strides = [1, 1]} : vector<8x32xbf16> to vector<8x8xbf16>
    %143 = vector.extract_strided_slice %19 {offsets = [0, 24], sizes = [8, 8], strides = [1, 1]} : vector<8x32xbf16> to vector<8x8xbf16>
    %cst_81 = arith.constant dense<0.000000e+00> : vector<8x8xf32>
    %144 = tpu.matmul %141, %142, %cst_81 {dimension_numbers = #tpu.dot_dimension_numbers<[1], [1], [0], [0], [0, 0, 1, 0], [], []>} : vector<8x8xbf16>, vector<8x8xbf16>, vector<8x8xf32> -> vector<8x8xf32>
    %cst_82 = arith.constant -1.000000e+30 : f32
    %145 = vector.broadcast %cst_82 : f32 to vector<8x8xf32>
    %146 = arith.select %25, %144, %145 : vector<8x8xi1>, vector<8x8xf32>
    %c3 = arith.constant 3 : index
    %c0_83 = arith.constant 0 : index
    %c0_84 = arith.constant 0 : index
    %147 = vector.load %arg13[%c3, %c0_83, %c0_84] : memref<4x8x1xf32, #tpu.memory_space<vmem>>, vector<1x8x1xf32>
    %148 = vector.shape_cast %147 : vector<1x8x1xf32> to vector<8x1xf32>
    %cst_85 = arith.constant dense<0xFF800000> : vector<8xf32>
    %149 = vector.multi_reduction <maximumf>, %146, %cst_85 [1] : vector<8x8xf32> to vector<8xf32>
    %150 = vector.shape_cast %149 : vector<8xf32> to vector<8x1xf32>
    %151 = arith.maximumf %148, %150 : vector<8x1xf32>
    %152 = arith.subf %148, %151 : vector<8x1xf32>
    %153 = math.exp %152 : vector<8x1xf32>
    %154 = vector.broadcast %151 : vector<8x1xf32> to vector<8x8xf32>
    %155 = arith.subf %146, %154 : vector<8x8xf32>
    %156 = math.exp %155 : vector<8x8xf32>
    %c3_86 = arith.constant 3 : index
    %c0_87 = arith.constant 0 : index
    %c0_88 = arith.constant 0 : index
    %157 = vector.load %arg14[%c3_86, %c0_87, %c0_88] : memref<4x8x1xf32, #tpu.memory_space<vmem>>, vector<1x8x1xf32>
    %158 = vector.shape_cast %157 : vector<1x8x1xf32> to vector<8x1xf32>
    %159 = arith.mulf %153, %158 : vector<8x1xf32>
    %cst_89 = arith.constant dense<0.000000e+00> : vector<8xf32>
    %160 = vector.multi_reduction <add>, %156, %cst_89 [1] : vector<8x8xf32> to vector<8xf32>
    %161 = vector.shape_cast %160 : vector<8xf32> to vector<8x1xf32>
    %162 = arith.addf %159, %161 : vector<8x1xf32>
    %c3_90 = arith.constant 3 : index
    %c0_91 = arith.constant 0 : index
    %c0_92 = arith.constant 0 : index
    %163 = vector.load %arg14[%c3_90, %c0_91, %c0_92] : memref<4x8x1xf32, #tpu.memory_space<vmem>>, vector<1x8x1xf32>
    %164 = vector.shape_cast %163 : vector<1x8x1xf32> to vector<8x1xf32>
    %165 = vector.shape_cast %162 : vector<8x1xf32> to vector<1x8x1xf32>
    tpu.vector_store %arg14[%c3_90, %c0_91, %c0_92], %165 {strides = array<i32>} : memref<4x8x1xf32, #tpu.memory_space<vmem>>, vector<1x8x1xf32>,
    %c3_93 = arith.constant 3 : index
    %c0_94 = arith.constant 0 : index
    %c0_95 = arith.constant 0 : index
    %166 = vector.load %arg15[%c3_93, %c0_94, %c0_95] : memref<4x8x8xf32, #tpu.memory_space<vmem>>, vector<1x8x8xf32>
    %167 = vector.shape_cast %166 : vector<1x8x8xf32> to vector<8x8xf32>
    %168 = vector.broadcast %153 : vector<8x1xf32> to vector<8x8xf32>
    %169 = arith.mulf %168, %167 : vector<8x8xf32>
    %170 = arith.truncf %156 : vector<8x8xf32> to vector<8x8xbf16>
    %cst_96 = arith.constant dense<0.000000e+00> : vector<8x8xf32>
    %171 = tpu.matmul %170, %143, %cst_96 {dimension_numbers = #tpu.dot_dimension_numbers<[1], [0], [0], [1], [0, 0, 1, 1], [], []>} : vector<8x8xbf16>, vector<8x8xbf16>, vector<8x8xf32> -> vector<8x8xf32>
    %172 = arith.addf %169, %171 : vector<8x8xf32>
    %c3_97 = arith.constant 3 : index
    %c0_98 = arith.constant 0 : index
    %c0_99 = arith.constant 0 : index
    %173 = vector.load %arg15[%c3_97, %c0_98, %c0_99] : memref<4x8x8xf32, #tpu.memory_space<vmem>>, vector<1x8x8xf32>
    %174 = vector.shape_cast %173 : vector<1x8x8xf32> to vector<8x8xf32>
    %175 = vector.shape_cast %172 : vector<8x8xf32> to vector<1x8x8xf32>
    tpu.vector_store %arg15[%c3_97, %c0_98, %c0_99], %175 {strides = array<i32>} : memref<4x8x8xf32, #tpu.memory_space<vmem>>, vector<1x8x8xf32>,
    %c3_100 = arith.constant 3 : index
    %c0_101 = arith.constant 0 : index
    %c0_102 = arith.constant 0 : index
    %176 = vector.load %arg13[%c3_100, %c0_101, %c0_102] : memref<4x8x1xf32, #tpu.memory_space<vmem>>, vector<1x8x1xf32>
    %177 = vector.shape_cast %176 : vector<1x8x1xf32> to vector<8x1xf32>
    %178 = vector.shape_cast %151 : vector<8x1xf32> to vector<1x8x1xf32>
    tpu.vector_store %arg13[%c3_100, %c0_101, %c0_102], %178 {strides = array<i32>} : memref<4x8x1xf32, #tpu.memory_space<vmem>>, vector<1x8x1xf32>,
    %c0_i32_103 = arith.constant 0 : i32
    %179 = arith.cmpi eq, %arg1, %c0_i32_103 : i32
    %180 = arith.extui %179 : i1 to i32
    %c0_i32_104 = arith.constant 0 : i32
    %181 = arith.cmpi ne, %180, %c0_i32_104 : i32
    scf.if %181 {
      %cst_105 = arith.constant 0.000000e+00 : f32
      %182 = vector.broadcast %cst_105 : f32 to vector<8x128xf32>
      %c0_106 = arith.constant 0 : index
      %c0_107 = arith.constant 0 : index
      %c0_108 = arith.constant 0 : index
      %183 = vector.load %arg15[%c0_106, %c0_107, %c0_108] : memref<4x8x8xf32, #tpu.memory_space<vmem>>, vector<1x8x8xf32>
      %184 = vector.shape_cast %183 : vector<1x8x8xf32> to vector<8x8xf32>
      %c0_109 = arith.constant 0 : index
      %c0_110 = arith.constant 0 : index
      %c0_111 = arith.constant 0 : index
      %185 = vector.load %arg14[%c0_109, %c0_110, %c0_111] : memref<4x8x1xf32, #tpu.memory_space<vmem>>, vector<1x8x1xf32>
      %186 = vector.shape_cast %185 : vector<1x8x1xf32> to vector<8x1xf32>
      %187 = vector.broadcast %186 : vector<8x1xf32> to vector<8x8xf32>
      %188 = arith.divf %184, %187 : vector<8x8xf32>
      %189 = arith.truncf %188 : vector<8x8xf32> to vector<8x8xbf16>
      %c0_112 = arith.constant 0 : index
      %c0_113 = arith.constant 0 : index
      %c0_114 = arith.constant 0 : index
      %190 = vector.load %arg9[%c0_112, %c0_113, %c0_114] : memref<4x8x128xbf16, #tpu.memory_space<vmem>>, vector<1x8x128xbf16>
      %191 = vector.shape_cast %190 : vector<1x8x128xbf16> to vector<8x128xbf16>
      %cst_115 = arith.constant dense<0.000000e+00> : vector<8x128xf32>
      %192 = tpu.matmul %189, %191, %cst_115 {dimension_numbers = #tpu.dot_dimension_numbers<[1], [0], [0], [1], [0, 0, 1, 1], [], []>} : vector<8x8xbf16>, vector<8x128xbf16>, vector<8x128xf32> -> vector<8x128xf32>
      %193 = arith.addf %182, %192 : vector<8x128xf32>
      %c1_116 = arith.constant 1 : index
      %c0_117 = arith.constant 0 : index
      %c0_118 = arith.constant 0 : index
      %194 = vector.load %arg15[%c1_116, %c0_117, %c0_118] : memref<4x8x8xf32, #tpu.memory_space<vmem>>, vector<1x8x8xf32>
      %195 = vector.shape_cast %194 : vector<1x8x8xf32> to vector<8x8xf32>
      %c1_119 = arith.constant 1 : index
      %c0_120 = arith.constant 0 : index
      %c0_121 = arith.constant 0 : index
      %196 = vector.load %arg14[%c1_119, %c0_120, %c0_121] : memref<4x8x1xf32, #tpu.memory_space<vmem>>, vector<1x8x1xf32>
      %197 = vector.shape_cast %196 : vector<1x8x1xf32> to vector<8x1xf32>
      %198 = vector.broadcast %197 : vector<8x1xf32> to vector<8x8xf32>
      %199 = arith.divf %195, %198 : vector<8x8xf32>
      %200 = arith.truncf %199 : vector<8x8xf32> to vector<8x8xbf16>
      %c1_122 = arith.constant 1 : index
      %c0_123 = arith.constant 0 : index
      %c0_124 = arith.constant 0 : index
      %201 = vector.load %arg9[%c1_122, %c0_123, %c0_124] : memref<4x8x128xbf16, #tpu.memory_space<vmem>>, vector<1x8x128xbf16>
      %202 = vector.shape_cast %201 : vector<1x8x128xbf16> to vector<8x128xbf16>
      %cst_125 = arith.constant dense<0.000000e+00> : vector<8x128xf32>
      %203 = tpu.matmul %200, %202, %cst_125 {dimension_numbers = #tpu.dot_dimension_numbers<[1], [0], [0], [1], [0, 0, 1, 1], [], []>} : vector<8x8xbf16>, vector<8x128xbf16>, vector<8x128xf32> -> vector<8x128xf32>
      %204 = arith.addf %193, %203 : vector<8x128xf32>
      %c2_126 = arith.constant 2 : index
      %c0_127 = arith.constant 0 : index
      %c0_128 = arith.constant 0 : index
      %205 = vector.load %arg15[%c2_126, %c0_127, %c0_128] : memref<4x8x8xf32, #tpu.memory_space<vmem>>, vector<1x8x8xf32>
      %206 = vector.shape_cast %205 : vector<1x8x8xf32> to vector<8x8xf32>
      %c2_129 = arith.constant 2 : index
      %c0_130 = arith.constant 0 : index
      %c0_131 = arith.constant 0 : index
      %207 = vector.load %arg14[%c2_129, %c0_130, %c0_131] : memref<4x8x1xf32, #tpu.memory_space<vmem>>, vector<1x8x1xf32>
      %208 = vector.shape_cast %207 : vector<1x8x1xf32> to vector<8x1xf32>
      %209 = vector.broadcast %208 : vector<8x1xf32> to vector<8x8xf32>
      %210 = arith.divf %206, %209 : vector<8x8xf32>
      %211 = arith.truncf %210 : vector<8x8xf32> to vector<8x8xbf16>
      %c2_132 = arith.constant 2 : index
      %c0_133 = arith.constant 0 : index
      %c0_134 = arith.constant 0 : index
      %212 = vector.load %arg9[%c2_132, %c0_133, %c0_134] : memref<4x8x128xbf16, #tpu.memory_space<vmem>>, vector<1x8x128xbf16>
      %213 = vector.shape_cast %212 : vector<1x8x128xbf16> to vector<8x128xbf16>
      %cst_135 = arith.constant dense<0.000000e+00> : vector<8x128xf32>
      %214 = tpu.matmul %211, %213, %cst_135 {dimension_numbers = #tpu.dot_dimension_numbers<[1], [0], [0], [1], [0, 0, 1, 1], [], []>} : vector<8x8xbf16>, vector<8x128xbf16>, vector<8x128xf32> -> vector<8x128xf32>
      %215 = arith.addf %204, %214 : vector<8x128xf32>
      %c3_136 = arith.constant 3 : index
      %c0_137 = arith.constant 0 : index
      %c0_138 = arith.constant 0 : index
      %216 = vector.load %arg15[%c3_136, %c0_137, %c0_138] : memref<4x8x8xf32, #tpu.memory_space<vmem>>, vector<1x8x8xf32>
      %217 = vector.shape_cast %216 : vector<1x8x8xf32> to vector<8x8xf32>
      %c3_139 = arith.constant 3 : index
      %c0_140 = arith.constant 0 : index
      %c0_141 = arith.constant 0 : index
      %218 = vector.load %arg14[%c3_139, %c0_140, %c0_141] : memref<4x8x1xf32, #tpu.memory_space<vmem>>, vector<1x8x1xf32>
      %219 = vector.shape_cast %218 : vector<1x8x1xf32> to vector<8x1xf32>
      %220 = vector.broadcast %219 : vector<8x1xf32> to vector<8x8xf32>
      %221 = arith.divf %217, %220 : vector<8x8xf32>
      %222 = arith.truncf %221 : vector<8x8xf32> to vector<8x8xbf16>
      %c3_142 = arith.constant 3 : index
      %c0_143 = arith.constant 0 : index
      %c0_144 = arith.constant 0 : index
      %223 = vector.load %arg9[%c3_142, %c0_143, %c0_144] : memref<4x8x128xbf16, #tpu.memory_space<vmem>>, vector<1x8x128xbf16>
      %224 = vector.shape_cast %223 : vector<1x8x128xbf16> to vector<8x128xbf16>
      %cst_145 = arith.constant dense<0.000000e+00> : vector<8x128xf32>
      %225 = tpu.matmul %222, %224, %cst_145 {dimension_numbers = #tpu.dot_dimension_numbers<[1], [0], [0], [1], [0, 0, 1, 1], [], []>} : vector<8x8xbf16>, vector<8x128xbf16>, vector<8x128xf32> -> vector<8x128xf32>
      %226 = arith.addf %215, %225 : vector<8x128xf32>
      %c0_146 = arith.constant 0 : index
      %c0_147 = arith.constant 0 : index
      %227 = vector.load %arg10[%c0_146, %c0_147] : memref<1x128xf32, #tpu.memory_space<vmem>>, vector<1x128xf32>
      %228 = vector.broadcast %227 : vector<1x128xf32> to vector<8x128xf32>
      %229 = arith.addf %226, %228 : vector<8x128xf32>
      %c0_148 = arith.constant 0 : index
      %c0_149 = arith.constant 0 : index
      %c0_150 = arith.constant 0 : index
      %230 = vector.load %arg11[%c0_148, %c0_149, %c0_150] : memref<1x8x128xf32, #tpu.memory_space<vmem>>, vector<1x8x128xf32>
      %231 = vector.shape_cast %230 : vector<1x8x128xf32> to vector<8x128xf32>
      %232 = vector.shape_cast %229 : vector<8x128xf32> to vector<1x8x128xf32>
      tpu.vector_store %arg11[%c0_148, %c0_149, %c0_150], %232 {strides = array<i32>} : memref<1x8x128xf32, #tpu.memory_space<vmem>>, vector<1x8x128xf32>,
    } else {
    }
    return
  }
  func.func @transform_0(%arg0: i32, %arg1: i32) -> (i32, i32, i32) {
    %c0_i32 = arith.constant 0 : i32
    %c0_i32_0 = arith.constant 0 : i32
    %c0_i32_1 = arith.constant 0 : i32
    return %arg0, %c0_i32, %c0_i32_0 : i32, i32, i32
  }
  func.func @transform_1(%arg0: i32, %arg1: i32) -> (i32, i32) {
    %c0_i32 = arith.constant 0 : i32
    %c0_i32_0 = arith.constant 0 : i32
    %c0_i32_1 = arith.constant 0 : i32
    return %c0_i32, %c0_i32_0 : i32, i32
  }
  func.func @transform_2(%arg0: i32, %arg1: i32) -> (i32, i32) {
    %c0_i32 = arith.constant 0 : i32
    %c0_i32_0 = arith.constant 0 : i32
    %c0_i32_1 = arith.constant 0 : i32
    return %c0_i32, %c0_i32_0 : i32, i32
  }
  func.func @transform_3(%arg0: i32, %arg1: i32) -> (i32, i32) {
    %c0_i32 = arith.constant 0 : i32
    %c0_i32_0 = arith.constant 0 : i32
    %c0_i32_1 = arith.constant 0 : i32
    return %c0_i32, %c0_i32_0 : i32, i32
  }
  func.func @transform_4(%arg0: i32, %arg1: i32) -> (i32, i32) {
    %c0_i32 = arith.constant 0 : i32
    %c0_i32_0 = arith.constant 0 : i32
    %c0_i32_1 = arith.constant 0 : i32
    return %c0_i32, %c0_i32_0 : i32, i32
  }
  func.func @transform_5(%arg0: i32, %arg1: i32) -> (i32, i32) {
    %c0_i32 = arith.constant 0 : i32
    %c0_i32_0 = arith.constant 0 : i32
    %c0_i32_1 = arith.constant 0 : i32
    return %c0_i32, %c0_i32_0 : i32, i32
  }
  func.func @transform_6(%arg0: i32, %arg1: i32) -> (i32, i32) {
    %c0_i32 = arith.constant 0 : i32
    %c0_i32_0 = arith.constant 0 : i32
    %c0_i32_1 = arith.constant 0 : i32
    return %c0_i32, %c0_i32_0 : i32, i32
  }
  func.func @transform_7(%arg0: i32, %arg1: i32) -> (i32, i32, i32) {
    %c0_i32 = arith.constant 0 : i32
    %c0_i32_0 = arith.constant 0 : i32
    %c0_i32_1 = arith.constant 0 : i32
    %c0_i32_2 = arith.constant 0 : i32
    return %c0_i32, %c0_i32_0, %c0_i32_1 : i32, i32, i32
  }
  func.func @transform_8(%arg0: i32, %arg1: i32) -> (i32, i32) {
    %c0_i32 = arith.constant 0 : i32
    %c0_i32_0 = arith.constant 0 : i32
    %c0_i32_1 = arith.constant 0 : i32
    return %c0_i32, %c0_i32_0 : i32, i32
  }
  func.func @transform_9(%arg0: i32, %arg1: i32) -> (i32, i32, i32) {
    %c0_i32 = arith.constant 0 : i32
    %c0_i32_0 = arith.constant 0 : i32
    %c0_i32_1 = arith.constant 0 : i32
    return %arg0, %c0_i32, %c0_i32_0 : i32, i32, i32
  }
}

</mosaic_0001>

<bundles_post_ra>
// kernel: bridge_attention_forward.1
= control target key start
LH: loop header
LB: loop body
LE: loop exit
PB: predicated region body
PF: predicated region fallthrough
CT: control target
= control target key end

     0   :  { %s1740_s30 = smov 0   ;;  %s1742_s10 = smov 0   ;;  %s2002_s0 = inlined_call_operand.vmem [shape: bf16[2,8,32], index: 0, kind: input, shape index: {}]   ;;  %s2003_s1 = inlined_call_operand.vmem [shape: bf16[32,32], index: 1, kind: input, shape index: {}]   ;;  %s2004_s2 = inlined_call_operand.vmem [shape: f32[1,32], index: 2, kind: input, shape index: {}]   ;;  %s2005_s3 = inlined_call_operand.vmem [shape: bf16[32,32], index: 3, kind: input, shape index: {}]   ;;  %s2006_s4 = inlined_call_operand.vmem [shape: f32[1,32], index: 4, kind: input, shape index: {}]   ;;  %s2007_s5 = inlined_call_operand.vmem [shape: bf16[32,32], index: 5, kind: input, shape index: {}]   ;;  %s2008_s6 = inlined_call_operand.vmem [shape: f32[1,32], index: 6, kind: input, shape index: {}]   ;;  %s2009_s7 = inlined_call_operand.vmem [shape: bf16[4,8,128], index: 7, kind: input, shape index: {}]   ;;  %s2010_s8 = inlined_call_operand.vmem [shape: f32[1,128], index: 8, kind: input, shape index: {}]   ;;  %s2011_s9 = inlined_call_operand.vmem [shape: f32[2,8,128], index: 9, kind: output, shape index: {}]  }
   0x1   :  { %s1744_s11 = smov 0  }
   0x2 LB: > { %s31_s12 = sadd.s32 1, %s1677_s10  ;;  %p1432_p0 = scmp.ge.s32.totalorder %s1681_s11, 1  ;;  %s1681_s11 = sphi %s1744_s11, %s19_s11   ;;  %s1677_s10 = sphi %s1742_s10, %s2013_s10   ;;  %s1673_s30 = sphi %s1740_s30, %s2012_s30  }
   0x3   : > { %p33_p1 = scmp.ge.s32.totalorder %s31_s12, 2  ;;  %p298_p2 = scmp.lt.s32.totalorder %s1681_s11, 3 }
   0x5   : > { %s2015_s12 = smov (%p33_p1, %s31_s12), 0  ;;  %p299_p3 = pnand %p1432_p0, %p298_p2 }
   0x6   : > { %v1628_v0 = vld [vmem:[%s2003_s1] sm:$0xff] (!%p299_p3)   ;;  %v1683_v1 = vmov (!%p299_p3), 0.0   ;;  %v1630_v3 = vld [vmem:[%s2003_s1 + $0x8] sm:$0xff] (!%p299_p3)   ;;  %vm1684_vm0 = vmmov (!%p299_p3), 0   ;;  %p332_p4 = scmp.lt.s32.totalorder (!%p299_p3), %s1673_s30, 1  ;;  %vm369_vm1 = vcmask (!%p299_p3), 261120   ;;  %v569_v36 = vlaneseq (!%p299_p3) }
   0x7   : > { %302 = sbr.rel (%p299_p3) target bundleno = 1391 (0x56f), region = 56  ;;  %1499 = vmatprep.subr.bf16.mxu0 (!%p299_p3), %v1683_v1  ;;  %1507 = vmatprep.subr.bf16.mxu1 (!%p299_p3), %v1683_v1  ;;  %v1629_v2 = vld [vmem:[%s2005_s3] sm:$0xff] (!%p299_p3)   ;;  %v1631_v4 = vld [vmem:[%s2005_s3 + $0x8] sm:$0xff] (!%p299_p3)   ;;  %vm426_vm2 = vcmask (!%p299_p3), 64512   ;;  %vm415_vm3 = vcmask (!%p299_p3), 257024   ;;  %s1685_s29 = smov (!%p299_p3), 112  }
   0x8   : > { %1500 = vmatpush3.bf16.msra.mxu0 (!%p299_p3), %v1628_v0  ;;  %1503 = vmatprep.mubr.msk.bf16.mxu0 (!%p299_p3), %vm1684_vm0, %v1683_v1  ;;  %427 = vst.msk [vmem:[#allocation5] sm:$0xff] (!%p299_p3), %vm426_vm2, %v1683_v1  ;;  %428 = vst.msk [vmem:[#allocation5 + $0x8] sm:$0xff] (!%p299_p3), %vm426_vm2, %v1683_v1  ;;  %v1435_v7 = vld [vmem:[%s2004_s2] ss:$0 sm:$0xff] (!%p299_p3)  ;;  %s1686_s13 = smov (!%p299_p3), 120   ;;  %s1687_s14 = smov (!%p299_p3), 104  }
   0x9   : > { %1508 = vmatpush3.bf16.msra.mxu1 (!%p299_p3), %v1629_v2  ;;  %1501 = vmatprep.subr.bf16.mxu0 (!%p299_p3), %v1683_v1  ;;  %429 = vst.msk [vmem:[#allocation5 + $0x10] sm:$0xff] (!%p299_p3), %vm426_vm2, %v1683_v1  ;;  %430 = vst.msk [vmem:[#allocation5 + $0x18] sm:$0xff] (!%p299_p3), %vm426_vm2, %v1683_v1  ;;  %v1439_v8 = vld [vmem:[%s2006_s4] ss:$0 sm:$0xff] (!%p299_p3)  ;;  %v1634_v26 = vld [vmem:[%s2007_s5 + $0x8] sm:$0xff] (!%p299_p3)   ;;  %v570_v37 = vshrl.u32 (!%p299_p3), %v569_v36, 7 }
   0xa   : > { %1509 = vmatprep.subr.bf16.mxu1 (!%p299_p3), %v1683_v1  ;;  %1511 = vmatprep.mubr.msk.bf16.mxu1 (!%p299_p3), %vm1684_vm0, %v1683_v1  ;;  %v1633_v25 = vld [vmem:[%s2007_s5] sm:$0xff] (!%p299_p3)   ;;  %v572_v38 = vand.u32 (!%p299_p3), 127, %v569_v36  ;;  %vm417_vm5 = vcmask (!%p299_p3), 7168   ;;  %v1688_v45 = vmov (!%p299_p3), -1e+30   ;;  %v1689_v46 = vmov (!%p299_p3), 0  }
   0xb   : > { %418 = vst.msk [vmem:[#allocation3] sm:$0xff] (!%p299_p3), %vm417_vm5, %v1688_v45  ;;  %419 = vst.msk [vmem:[#allocation3 + $0x8] sm:$0xff] (!%p299_p3), %vm417_vm5, %v1688_v45  ;;  %1626 = vset.pattern.permute.xlu1 (!%p299_p3), %v1689_v46  ;;  %1627 = vset.pattern.permute.xlu0 (!%p299_p3), %v1689_v46  ;;  %vm660_vm6 = vcmask (!%p299_p3), 1043456  }
   0xc   : > { %1502 = vmatpush3.bf16.msra.mxu0 (!%p299_p3), %v1630_v3  ;;  %vm575_vm4 = vcmp.ge.s32.totalorder (!%p299_p3), %v570_v37, %v572_v38  ;;  %420 = vst.msk [vmem:[#allocation3 + $0x10] sm:$0xff] (!%p299_p3), %vm417_vm5, %v1688_v45  ;;  %421 = vst.msk [vmem:[#allocation3 + $0x18] sm:$0xff] (!%p299_p3), %vm417_vm5, %v1688_v45 }
   0xd   : > { %1510 = vmatpush3.bf16.msra.mxu1 (!%p299_p3), %v1631_v4  ;;  %1515 = vmatprep.subr.bf16.mxu0 (!%p299_p3), %v1683_v1  ;;  %422 = vst.msk [vmem:[#allocation4] sm:$0xff] (!%p299_p3), %vm417_vm5, %v1683_v1  ;;  %423 = vst.msk [vmem:[#allocation4 + $0x8] sm:$0xff] (!%p299_p3), %vm417_vm5, %v1683_v1 }
   0xe   : > { %s2017_s30 = smov (!%p332_p4, %s1673_s30), 1  ;;  %1523 = vmatprep.subr.bf16.mxu1 %v1683_v1  ;;  %424 = vst.msk [vmem:[#allocation4 + $0x10] sm:$0xff] %vm417_vm5, %v1683_v1  ;;  %425 = vst.msk [vmem:[#allocation4 + $0x18] sm:$0xff] %vm417_vm5, %v1683_v1 }
   0xf   : > { %s1433_s21 = sshll.u32 %s2017_s30, 2 }
  0x10   : > { %s335_s24 = scalar_lea.vmem %s2002_s0, %s1433_s21 }
  0x11   : > { %v345_v5 = vld [vmem:[%s335_s24] sm:$0xf] }
  0x12   : > { %v436_v6 = vld [vmem:[%s335_s24] sm:$0xf]  ;;  %1504 = vmatmul.mubr.msk.bf16.vlgmr.msra.gmra.mrb[0].mxu0 %vm369_vm1, %v345_v5  ;;  %v1875_v2 = vld [vmem:[#allocation3] sm:$0xff] }
  0x13   : > { %1512 = vmatmul.mubr.msk.bf16.vlgmr.msra.gmra.mrb[0].mxu1 %vm369_vm1, %v436_v6  ;;  %1519 = vmatprep.mubr.msk.bf16.mxu0 %vm1684_vm0, %v1683_v1 }
  0x14   : > { %1525 = vmatprep.mubr.msk.bf16.mxu1 %vm1684_vm0, %v1683_v1  ;;  %1516 = vmatpush3.bf16.msra.mxu0 %v1633_v25 }
  0x15   : > { %1517 = vmatprep.subr.bf16.mxu0 %v1683_v1 }
  0x18   : > { %1518 = vmatpush3.bf16.msra.mxu0 %v1634_v26 }
  0x19   : > { %1529 = vmatprep.subr.bf16.mxu0 %v1683_v1 }
  0x1b   : > { %1520 = vmatmul.mubr.msk.bf16.vlgmr.msra.gmra.mrb[4].mxu0 %vm369_vm1, %v436_v6  ;;  %v1443_v6 = vld [vmem:[%s2008_s6] ss:$0 sm:$0xff] }
  0x1c   : > { %1531 = vmatprep.mubr.msk.bf16.mxu0 %vm1684_vm0, %v1683_v1 }
  0xe5   : > { %v407_v9 = vpop.f32.mrb[0].mxu0 }
  0xe6   : > { %v408_v10 = vadd.f32 %v1435_v7, %v407_v9  ;;  %v498_v11 = vpop.f32.mrb[0].mxu1  ;;  %v1505_v12 = vpop.f32.mrb[1].mxu0 }
  0xe7   : > { %v499_v13 = vadd.f32 %v1439_v8, %v498_v11  ;;  %v1513_v14 = vpop.f32.mrb[1].mxu1  ;;  %v410_v15 = vpop.f32.mrb[2].mxu0 }
  0xe8   : > { %v413_v16 = vmul.f32 0.35355338, %v408_v10  ;;  %v501_v17 = vpop.f32.mrb[2].mxu1  ;;  %v1506_v18 = vpop.f32.mrb[3].mxu0  ;;  %v763_v14 = vld [vmem:[#allocation3 + $0x8] sm:$0xff] }
  0xe9   : > { %v567_v19 = vpack.c.bf16 %v499_v13, %v499_v13  ;;  %v1514_v20 = vpop.f32.mrb[3].mxu1  ;;  %v1891_v17 = vld [vmem:[#allocation3 + $0x10] sm:$0xff] }
  0xea   : > { %v414_v21 = vpack.c.bf16 %v413_v16, %v413_v16 }
  0xeb   : > { %850 = vrot.lane.b32.xlu1 %v567_v19, %s1685_s29  ;;  %713 = vrot.lane.b32.xlu0 %v567_v19, %s1686_s13  ;;  %v582_v22 = vsel %vm426_vm2, %v567_v19, 0 }
  0xec   : > { %416 = vst.msk [vmem:[#allocation2] sm:$0xf] %vm415_vm3, %v414_v21  ;;  %1524 = vmatpush3.bf16.xpose.msra.mxu1 %v582_v22 }
  0xed   : > { %1535 = vmatprep.subr.bf16.mxu1 %v1683_v1 }
  0xee   : > { %v561_v7 = vpop.f32.mrb[4].mxu0 }
  0xef   : > { %v562_v8 = vadd.f32 %v1443_v6, %v561_v7  ;;  %v1521_v9 = vpop.f32.mrb[5].mxu0  ;;  %v780_v7 = vld [vmem:[#allocation4 + $0x8] sm:$0xff] }
  0xf0   : > { %v564_v10 = vpop.f32.mrb[6].mxu0 }
  0xf1   : > { %v568_v11 = vpack.c.bf16 %v562_v8, %v562_v8  ;;  %v1522_v12 = vpop.f32.mrb[7].mxu0 }
  0xf3   : > { %v576_v23 = vld [vmem:[#allocation2] sm:$0xf]  ;;  %v662_v13 = vsel %vm660_vm6, %v568_v11, 0 }
  0xf4   : > { %1526 = vmatmul.mubr.msk.bf16.vlgmr.msra.gmra.mrb[4].mxu1 %vm426_vm2, %v576_v23  ;;  %v1449_v24 = vcombine.low %v576_v23, %v576_v23  ;;  %1530 = vmatpush3.bf16.msra.mxu0 %v662_v13  ;;  %v1902_v23 = vld [vmem:[#allocation3 + $0x18] sm:$0xff]  ;;  %v917_v13 = vld [vmem:[#allocation4 + $0x10] sm:$0xff] }
  0xf5   : > { %1537 = vmatprep.mubr.msk.bf16.mxu1 %vm1684_vm0, %v1683_v1  ;;  %1541 = vmatprep.subr.bf16.mxu0 %v1683_v1 }
  0xf6   : > { %848 = vrot.lane.b32.xlu1 %v1449_v24, %s1685_s29  ;;  %710 = vrot.lane.b32.xlu0 %v1449_v24, %s1686_s13 }
  0xfa   : > { %984 = vrot.lane.b32.xlu1 %v1449_v24, %s1687_s14  ;;  %986 = vrot.lane.b32.xlu0 %v567_v19, %s1687_s14 }
 0x15d   : > { %v714_v27 = vpop.permute.xlu0 %713  ;;  %v851_v29 = vpop.permute.xlu1 %850 }
 0x15e   : > { %v719_v28 = vsel %vm426_vm2, %v714_v27, 0  ;;  %v856_v31 = vsel %vm426_vm2, %v851_v29, 0 }
 0x15f   : > { %1536 = vmatpush3.bf16.xpose.msra.mxu1 %v719_v28 }
 0x160   : > { %1547 = vmatprep.subr.bf16.mxu1 %v1683_v1 }
 0x168   : > { %v711_v30 = vpop.permute.xlu0 %710  ;;  %v849_v33 = vpop.permute.xlu1 %848 }
 0x169   : > { %1538 = vmatmul.mubr.msk.bf16.vlgmr.msra.gmra.mrb[8].mxu1 %vm426_vm2, %v711_v30 }
 0x16a   : > { %1548 = vmatpush3.bf16.xpose.msra.mxu1 %v856_v31  ;;  %1549 = vmatprep.mubr.msk.bf16.mxu1 %vm1684_vm0, %v1683_v1 }
 0x16b   : > { %1559 = vmatprep.subr.bf16.mxu1 %v1683_v1 }
 0x16c   : > { %v987_v32 = vpop.permute.xlu0 %986  ;;  %v985_v35 = vpop.permute.xlu1 %984 }
 0x16d   : > { %v992_v34 = vsel %vm426_vm2, %v987_v32, 0 }
 0x171   : > { %1550 = vmatmul.mubr.msk.bf16.vlgmr.msra.gmra.mrb[12].mxu1 %vm426_vm2, %v849_v33 }
 0x172   : > { %1560 = vmatpush3.bf16.xpose.msra.mxu1 %v992_v34  ;;  %1561 = vmatprep.mubr.msk.bf16.mxu1 %vm1684_vm0, %v1683_v1 }
 0x173   : > { %1571 = vmatprep.subr.bf16.mxu1 %v1683_v1 }
 0x179   : > { %1562 = vmatmul.mubr.msk.bf16.vlgmr.msra.gmra.mrb[16].mxu1 %vm426_vm2, %v985_v35 }
 0x17a   : > { %1573 = vmatprep.mubr.msk.bf16.mxu1 %vm1684_vm0, %v1683_v1 }
 0x1c7   : > { %v618_v39 = vpop.f32.mrb[4].mxu1 }
 0x1c8   : > { %v1844_v40 = vsel %vm575_vm4, %v618_v39, -1e+30  ;;  %v1527_v41 = vpop.f32.mrb[5].mxu1 }
 0x1c9   : > { %v621_v42 = vpop.f32.mrb[6].mxu1  ;;  %v626_v43 = vsel %vm426_vm2, %v1844_v40, -inf }
 0x1ca   : > { %627 = vmax.xlane.f32.xlu0 %v626_v43  ;;  %v1528_v44 = vpop.f32.mrb[7].mxu1 }
 0x23c   : > { %v755_v47 = vpop.f32.mrb[8].mxu1 }
 0x23d   : > { %v1861_v48 = vsel %vm575_vm4, %v755_v47, -1e+30  ;;  %v1539_v49 = vpop.f32.mrb[9].mxu1 }
 0x23e   : > { %v758_v50 = vpop.f32.mrb[10].mxu1  ;;  %v764_v51 = vsel %vm426_vm2, %v1861_v48, -inf }
 0x23f   : > { %765 = vmax.xlane.f32.xlu1 %v764_v51  ;;  %v1540_v52 = vpop.f32.mrb[11].mxu1 }
 0x244   : > { %v892_v53 = vpop.f32.mrb[12].mxu1 }
 0x245   : > { %v1866_v54 = vsel %vm575_vm4, %v892_v53, -1e+30  ;;  %v1551_v55 = vpop.f32.mrb[13].mxu1 }
 0x246   : > { %v895_v56 = vpop.f32.mrb[14].mxu1  ;;  %v901_v57 = vsel %vm426_vm2, %v1866_v54, -inf }
 0x247   : > { %902 = vmax.xlane.f32.xlu0 %v901_v57  ;;  %v1552_v58 = vpop.f32.mrb[15].mxu1 }
 0x24c   : > { %v1028_v59 = vpop.f32.mrb[16].mxu1 }
 0x24d   : > { %v1871_v60 = vsel %vm575_vm4, %v1028_v59, -1e+30  ;;  %v1563_v61 = vpop.f32.mrb[17].mxu1 }
 0x24e   : > { %v1031_v62 = vpop.f32.mrb[18].mxu1  ;;  %v1037_v63 = vsel %vm426_vm2, %v1871_v60, -inf }
 0x24f   : > { %1038 = vmax.xlane.f32.xlu0 %v1037_v63  ;;  %v1564_v0 = vpop.f32.mrb[19].mxu1 }
 0x257   : > { %v628_v3 = vpop.xlane.xlu0 %627 }
 0x258   : > { %v1878_v4 = vmax.f32 %v1875_v2, %v628_v3 }
 0x25a   : > { %v630_v5 = vsub.f32 %v1875_v2, %v1878_v4  ;;  %706 = vst.msk [vmem:[#allocation3] sm:$0xff] %vm417_vm5, %v1878_v4  ;;  %635 = vperm.xlu1 %1626, %v1878_v4  }
 0x25c   : > { %v631_v52 = vmul.f32 1.442695, %v630_v5 }
 0x2cc   : > { %v766_v15 = vpop.xlane.xlu1 %765 }
 0x2cd   : > { %v767_v16 = vmax.f32 %v763_v14, %v766_v15 }
 0x2cf   : > { %847 = vst.msk [vmem:[#allocation3 + $0x8] sm:$0xff] %vm417_vm5, %v767_v16  ;;  %773 = vperm.xlu0 %1627, %v767_v16   ;;  %v768_v31 = vsub.f32 %v763_v14, %v767_v16 }
 0x2d1   : > { %v769_v32 = vmul.f32 1.442695, %v768_v31 }
 0x2d4   : > { %v903_v18 = vpop.xlane.xlu0 %902 }
 0x2d5   : > { %v1894_v19 = vmax.f32 %v1891_v17, %v903_v18 }
 0x2d7   : > { %v905_v20 = vsub.f32 %v1891_v17, %v1894_v19  ;;  %983 = vst.msk [vmem:[#allocation3 + $0x10] sm:$0xff] %vm417_vm5, %v1894_v19  ;;  %910 = vperm.xlu1 %1626, %v1894_v19   ;;  %v1053_v19 = vld [vmem:[#allocation4 + $0x18] sm:$0xff] }
 0x2d9   : > { %v636_v21 = vpop.permute.xlu1 %635  ;;  %v906_v6 = vmul.f32 1.442695, %v905_v20 }
 0x2da   : > { %v638_v22 = vsub.f32 %v1844_v40, %v636_v21 }
 0x2dc   : > { %v639_v24 = vmul.f32 1.442695, %v638_v22  ;;  %v1039_v25 = vpop.xlane.xlu0 %1038 }
 0x2dd   : > { %v1905_v26 = vmax.f32 %v1902_v23, %v1039_v25 }
 0x2de   : > { %1635 = vpow2.f32 %v639_v24  ;;  %v1456_v24 = vld [vmem:[%s2009_s7 + $0x4] sm:$0xf] }
 0x2df   : > { %v1041_v27 = vsub.f32 %v1902_v23, %v1905_v26  ;;  %1119 = vst.msk [vmem:[#allocation3 + $0x18] sm:$0xff] %vm417_vm5, %v1905_v26  ;;  %1046 = vperm.xlu1 %1626, %v1905_v26   ;;  %1637 = vpow2.f32 %v769_v32  ;;  %v1150_v25 = vsel %vm660_vm6, %v1456_v24, 0 }
 0x2e0   : > { %1572 = vmatpush3.bf16.msra.mxu1 %v1150_v25 }
 0x2e1   : > { %v1042_v8 = vmul.f32 1.442695, %v1041_v27  ;;  %1583 = vmatprep.subr.bf16.mxu1 %v1683_v1  ;;  %v1133_v27 = vld [vmem:[%s2009_s7] sm:$0xf] }
 0x2e3   : > { %797 = vrot.lane.b32.xlu1 %v568_v11, %s1686_s13 }
 0x2e7   : > { %933 = vrot.lane.b32.xlu1 %v568_v11, %s1685_s29  ;;  %s1434_s29 = sshll.u32 %s2017_s30, 3 }
 0x2e8   : > { %v1636_v28 = vpop.eup %1635  ;;  %s339_s17 = scalar_lea.vmem %s2011_s9, %s1434_s29 }
 0x2e9   : > { %v656_v29 = vpack.c.bf16 %v1636_v28, %v1636_v28  ;;  %v643_v30 = vsel %vm426_vm2, %v1636_v28, 0.0  ;;  %v1638_v33 = vpop.eup %1637  ;;  %v1196_v28 = vsel %vm660_vm6, %v1133_v27, 0 }
 0x2ea   : > { %v781_v9 = vmul.f32 %v1638_v33, %v780_v7 }
 0x2eb   : > { %1532 = vmatmul.mubr.msk.bf16.vlgmr.msra.gmra.mrb[8].mxu0 %vm426_vm2, %v656_v29  ;;  %1069 = vrot.lane.b32.xlu1 %v568_v11, %s1687_s14  ;;  %v788_v29 = vld [vmem:[#allocation5 + $0x8] sm:$0xff] }
 0x2ec   : > { %1543 = vmatprep.mubr.msk.bf16.mxu0 %vm1684_vm0, %v1683_v1 }
 0x2ee   : > { %644 = vadd.xlane.f32.xlu0 %v643_v30 }
 0x304   : > { %791 = vperm.xlu0 %1627, %v1638_v33  }
 0x34e   : > { %v774_v34 = vpop.permute.xlu0 %773 }
 0x34f   : > { %v776_v35 = vsub.f32 %v1861_v48, %v774_v34 }
 0x351   : > { %v777_v36 = vmul.f32 1.442695, %v776_v35 }
 0x353   : > { %1639 = vpow2.f32 %v777_v36 }
 0x356   : > { %v911_v37 = vpop.permute.xlu1 %910 }
 0x357   : > { %v913_v38 = vsub.f32 %v1866_v54, %v911_v37 }
 0x359   : > { %v914_v39 = vmul.f32 1.442695, %v913_v38 }
 0x35b   : > { %1641 = vpow2.f32 %v914_v39 }
 0x35d   : > { %v1640_v40 = vpop.eup %1639 }
 0x35e   : > { %v1047_v41 = vpop.permute.xlu1 %1046  ;;  %v782_v42 = vsel %vm426_vm2, %v1640_v40, 0.0  ;;  %v795_v48 = vpack.c.bf16 %v1640_v40, %v1640_v40 }
 0x35f   : > { %v1049_v43 = vsub.f32 %v1871_v60, %v1047_v41  ;;  %783 = vadd.xlane.f32.xlu1 %v782_v42  ;;  %v641_v60 = vld [vmem:[#allocation4] sm:$0xff] }
 0x361   : > { %v1050_v44 = vmul.f32 1.442695, %v1049_v43 }
 0x362   : > { %v798_v45 = vpop.permute.xlu1 %797 }
 0x363   : > { %1643 = vpow2.f32 %v1050_v44  ;;  %v803_v46 = vsel %vm660_vm6, %v798_v45, 0 }
 0x364   : > { %1542 = vmatpush3.bf16.msra.mxu0 %v803_v46  ;;  %1645 = vpow2.f32 %v631_v52  ;;  %v649_v46 = vld [vmem:[#allocation5] sm:$0xff] }
 0x365   : > { %v1642_v47 = vpop.eup %1641  ;;  %1553 = vmatprep.subr.bf16.mxu0 %v1683_v1  ;;  %1647 = vpow2.f32 %v906_v6  ;;  %v1461_v6 = vld [vmem:[%s2009_s7 + $0xc] sm:$0xf] }
 0x366   : > { %v919_v49 = vsel %vm426_vm2, %v1642_v47, 0.0  ;;  %v934_v50 = vpop.permute.xlu1 %933  ;;  %v932_v55 = vpack.c.bf16 %v1642_v47, %v1642_v47  ;;  %1649 = vpow2.f32 %v1042_v8 }
 0x367   : > { %920 = vadd.xlane.f32.xlu1 %v919_v49  ;;  %1544 = vmatmul.mubr.msk.bf16.vlgmr.msra.gmra.mrb[12].mxu0 %vm426_vm2, %v795_v48  ;;  %v939_v51 = vsel %vm660_vm6, %v934_v50, 0  ;;  %v925_v50 = vld [vmem:[#allocation5 + $0x10] sm:$0xff] }
 0x368   : > { %1554 = vmatpush3.bf16.msra.mxu0 %v939_v51  ;;  %1555 = vmatprep.mubr.msk.bf16.mxu0 %vm1684_vm0, %v1683_v1 }
 0x369   : > { %1565 = vmatprep.subr.bf16.mxu0 %v1683_v1 }
 0x36a   : > { %v1070_v53 = vpop.permute.xlu1 %1069 }
 0x36b   : > { %v1075_v56 = vsel %vm660_vm6, %v1070_v53, 0 }
 0x36d   : > { %v1644_v54 = vpop.eup %1643 }
 0x36e   : > { %v1055_v57 = vsel %vm426_vm2, %v1644_v54, 0.0  ;;  %v1068_v58 = vpack.c.bf16 %v1644_v54, %v1644_v54  ;;  %v1646_v59 = vpop.eup %1645 }
 0x36f   : > { %1056 = vadd.xlane.f32.xlu1 %v1055_v57  ;;  %1556 = vmatmul.mubr.msk.bf16.vlgmr.msra.gmra.mrb[16].mxu0 %vm426_vm2, %v932_v55  ;;  %v642_v61 = vmul.f32 %v1646_v59, %v641_v60  ;;  %v1648_v12 = vpop.eup %1647  ;;  %v1061_v55 = vld [vmem:[#allocation5 + $0x18] sm:$0xff] }
 0x370   : > { %1566 = vmatpush3.bf16.msra.mxu0 %v1075_v56  ;;  %1567 = vmatprep.mubr.msk.bf16.mxu0 %vm1684_vm0, %v1683_v1  ;;  %v918_v14 = vmul.f32 %v1648_v12, %v917_v13  ;;  %v1650_v17 = vpop.eup %1649 }
 0x371   : > { %1577 = vmatprep.subr.bf16.mxu0 %v1683_v1  ;;  %v1054_v20 = vmul.f32 %v1650_v17, %v1053_v19 }
 0x377   : > { %1568 = vmatmul.mubr.msk.bf16.vlgmr.msra.gmra.mrb[20].mxu0 %vm426_vm2, %v1068_v58 }
 0x378   : > { %1579 = vmatprep.mubr.msk.bf16.mxu0 %vm1684_vm0, %v1683_v1  ;;  %1578 = vmatpush3.bf16.msra.mxu0 %v1196_v28 }
 0x379   : > { %1589 = vmatprep.subr.bf16.mxu0 %v1683_v1 }
 0x37b   : > { %v645_v62 = vpop.xlane.xlu0 %644 }
 0x37c   : > { %v646_v63 = vadd.f32 %v645_v62, %v642_v61 }
 0x37e   : > { %648 = vst.msk [vmem:[#allocation4] sm:$0xff] %vm417_vm5, %v646_v63 }
 0x383   : > { %v792_v30 = vpop.permute.xlu0 %791 }
 0x384   : > { %v794_v31 = vmul.f32 %v792_v30, %v788_v29 }
 0x385   : > { %v1124_v0 = vld [vmem:[#allocation4] sm:$0xff] }
 0x386   : > { %1127 = vperm.xlu0 %1627, %v1124_v0  }
 0x3be   : > { %v1944_v2 = vpop.f32.mrb[8].mxu0 }
 0x3bf   : > { %v1533_v3 = vpop.f32.mrb[9].mxu0 }
 0x3c0   : > { %v701_v4 = vpop.f32.mrb[10].mxu0 }
 0x3c1   : > { %v1534_v5 = vpop.f32.mrb[11].mxu0 }
 0x3ec   : > { %v784_v10 = vpop.xlane.xlu1 %783 }
 0x3ed   : > { %v785_v11 = vadd.f32 %v784_v10, %v781_v9  ;;  %v1313_v10 = vsel %vm660_vm6, %v1461_v6, 0 }
 0x3ef   : > { %786 = vst.msk [vmem:[#allocation4 + $0x8] sm:$0xff] %vm417_vm5, %v785_v11 }
 0x3f4   : > { %v921_v15 = vpop.xlane.xlu1 %920 }
 0x3f5   : > { %v922_v16 = vadd.f32 %v921_v15, %v918_v14 }
 0x3f6   : > { %v1135_v18 = vld [vmem:[#allocation4 + $0x8] sm:$0xff] }
 0x3f7   : > { %923 = vst.msk [vmem:[#allocation4 + $0x10] sm:$0xff] %vm417_vm5, %v922_v16  ;;  %1138 = vperm.xlu1 %1626, %v1135_v18  }
 0x3fb   : > { %652 = vperm.xlu1 %1626, %v1646_v59   ;;  %v1459_v59 = vld [vmem:[%s2009_s7 + $0x8] sm:$0xf] }
 0x3fc   : > { %v1057_v21 = vpop.xlane.xlu1 %1056  ;;  %v1254_v0 = vsel %vm660_vm6, %v1459_v59, 0 }
 0x3fd   : > { %v1058_v22 = vadd.f32 %v1057_v21, %v1054_v20 }
 0x3fe   : > { %v1239_v23 = vld [vmem:[#allocation4 + $0x10] sm:$0xff] }
 0x3ff   : > { %1059 = vst.msk [vmem:[#allocation4 + $0x18] sm:$0xff] %vm417_vm5, %v1058_v22  ;;  %928 = vperm.xlu1 %1626, %v1648_v12   ;;  %1242 = vperm.xlu0 %1627, %v1239_v23  }
 0x403   : > { %1064 = vperm.xlu1 %1626, %v1650_v17  }
 0x405   : > { %v1128_v47 = vpop.permute.xlu0 %1127 }
 0x406   : > { %v1298_v26 = vld [vmem:[#allocation4 + $0x18] sm:$0xff] }
 0x407   : > { %1301 = vperm.xlu0 %1627, %v1298_v26  }
 0x43a   : > { %v839_v32 = vpop.f32.mrb[12].mxu0 }
 0x43b   : > { %v845_v33 = vadd.f32 %v839_v32, %v794_v31  ;;  %v1545_v34 = vpop.f32.mrb[13].mxu0  ;;  %v1463_v32 = vld [vmem:[%s2010_s8] ss:$0 sm:$0xff] }
 0x43c   : > { %v842_v35 = vpop.f32.mrb[14].mxu0 }
 0x43d   : > { %846 = vst.msk [vmem:[#allocation5 + $0x8] sm:$0xff] %vm426_vm2, %v845_v33  ;;  %v1546_v36 = vpop.f32.mrb[15].mxu0 }
 0x442   : > { %v975_v37 = vpop.f32.mrb[16].mxu0 }
 0x443   : > { %v1557_v38 = vpop.f32.mrb[17].mxu0 }
 0x444   : > { %v978_v39 = vpop.f32.mrb[18].mxu0  ;;  %v1134_v57 = vld [vmem:[#allocation5 + $0x8] sm:$0xff] }
 0x445   : > { %v1558_v40 = vpop.f32.mrb[19].mxu0 }
 0x44a   : > { %v1111_v41 = vpop.f32.mrb[20].mxu0 }
 0x44b   : > { %v1569_v42 = vpop.f32.mrb[21].mxu0 }
 0x44c   : > { %v1114_v43 = vpop.f32.mrb[22].mxu0 }
 0x44d   : > { %v1570_v44 = vpop.f32.mrb[23].mxu0 }
 0x476   : > { %v1139_v45 = vpop.permute.xlu1 %1138 }
 0x477   : > { %1651 = vrcp.f32 %v1139_v45 }
 0x478   : > { %1653 = vrcp.f32 %v1128_v47 }
 0x47a   : > { %v653_v48 = vpop.permute.xlu1 %652 }
 0x47b   : > { %v655_v49 = vmul.f32 %v653_v48, %v649_v46 }
 0x47d   : > { %v704_v51 = vadd.f32 %v1944_v2, %v655_v49 }
 0x47e   : > { %v1243_v52 = vpop.permute.xlu0 %1242  ;;  %v929_v53 = vpop.permute.xlu1 %928 }
 0x47f   : > { %705 = vst.msk [vmem:[#allocation5] sm:$0xff] %vm426_vm2, %v704_v51  ;;  %1655 = vrcp.f32 %v1243_v52  ;;  %v931_v54 = vmul.f32 %v929_v53, %v925_v50 }
 0x481   : > { %v1652_v56 = vpop.eup %1651  ;;  %v981_v58 = vadd.f32 %v975_v37, %v931_v54 }
 0x482   : > { %v1142_v60 = vmul.f32 %v1652_v56, %v1134_v57  ;;  %v1065_v61 = vpop.permute.xlu1 %1064  ;;  %v1654_v3 = vpop.eup %1653 }
 0x483   : > { %982 = vst.msk [vmem:[#allocation5 + $0x10] sm:$0xff] %vm426_vm2, %v981_v58  ;;  %v1067_v62 = vmul.f32 %v1065_v61, %v1061_v55 }
 0x484   : > { %v1143_v63 = vpack.c.bf16 %v1142_v60, %v1142_v60 }
 0x485   : > { %v1117_v2 = vadd.f32 %v1111_v41, %v1067_v62 }
 0x486   : > { %v1302_v4 = vpop.permute.xlu0 %1301  ;;  %1574 = vmatmul.mubr.msk.bf16.vlgmr.msra.gmra.mrb[20].mxu1 %vm426_vm2, %v1143_v63  ;;  %v1123_v5 = vld [vmem:[#allocation5] sm:$0xff] }
 0x487   : > { %1118 = vst.msk [vmem:[#allocation5 + $0x18] sm:$0xff] %vm426_vm2, %v1117_v2  ;;  %1657 = vrcp.f32 %v1302_v4  ;;  %v1131_v7 = vmul.f32 %v1654_v3, %v1123_v5  ;;  %1584 = vmatpush3.bf16.msra.mxu1 %v1254_v0  ;;  %1585 = vmatprep.mubr.msk.bf16.mxu1 %vm1684_vm0, %v1683_v1 }
 0x489   : > { %v1656_v8 = vpop.eup %1655  ;;  %v1132_v9 = vpack.c.bf16 %v1131_v7, %v1131_v7 }
 0x48a   : > { %v1238_v11 = vld [vmem:[#allocation5 + $0x10] sm:$0xff] }
 0x48b   : > { %1580 = vmatmul.mubr.msk.bf16.vlgmr.msra.gmra.mrb[24].mxu0 %vm426_vm2, %v1132_v9  ;;  %v1246_v12 = vmul.f32 %v1656_v8, %v1238_v11 }
 0x48c   : > { %1590 = vmatpush3.bf16.msra.mxu0 %v1313_v10  ;;  %1591 = vmatprep.mubr.msk.bf16.mxu0 %vm1684_vm0, %v1683_v1 }
 0x48d   : > { %v1247_v13 = vpack.c.bf16 %v1246_v12, %v1246_v12 }
 0x48e   : > { %v1297_v15 = vld [vmem:[#allocation5 + $0x18] sm:$0xff] }
 0x48f   : > { %1586 = vmatmul.mubr.msk.bf16.vlgmr.msra.gmra.mrb[24].mxu1 %vm426_vm2, %v1247_v13 }
 0x491   : > { %v1658_v14 = vpop.eup %1657 }
 0x492   : > { %v1305_v16 = vmul.f32 %v1658_v14, %v1297_v15 }
 0x494   : > { %v1306_v18 = vpack.c.bf16 %v1305_v16, %v1305_v16 }
 0x496   : > { %1592 = vmatmul.mubr.msk.bf16.vlgmr.msra.gmra.mrb[28].mxu0 %vm426_vm2, %v1306_v18 }
 0x559   : > { %v1186_v17 = vpop.f32.mrb[20].mxu1 }
 0x55a   : > { %v1575_v19 = vpop.f32.mrb[21].mxu1 }
 0x55b   : > { %v1189_v20 = vpop.f32.mrb[22].mxu1 }
 0x55c   : > { %v1576_v21 = vpop.f32.mrb[23].mxu1 }
 0x55e   : > { %v1232_v22 = vpop.f32.mrb[24].mxu0 }
 0x55f   : > { %v1233_v23 = vadd.f32 %v1232_v22, %v1186_v17  ;;  %v1581_v24 = vpop.f32.mrb[25].mxu0 }
 0x560   : > { %v1235_v25 = vpop.f32.mrb[26].mxu0 }
 0x561   : > { %v1582_v26 = vpop.f32.mrb[27].mxu0 }
 0x562   : > { %v1290_v1 = vpop.f32.mrb[24].mxu1 }
 0x563   : > { %v1296_v27 = vadd.f32 %v1290_v1, %v1233_v23  ;;  %v1587_v28 = vpop.f32.mrb[25].mxu1 }
 0x564   : > { %v1293_v29 = vpop.f32.mrb[26].mxu1 }
 0x565   : > { %v1588_v30 = vpop.f32.mrb[27].mxu1 }
 0x569   : > { %v1349_v31 = vpop.f32.mrb[28].mxu0 }
 0x56a   : > { %v1355_v33 = vadd.f32 %v1349_v31, %v1296_v27  ;;  %v1593_v34 = vpop.f32.mrb[29].mxu0 }
 0x56b   : > { %v1352_v35 = vpop.f32.mrb[30].mxu0 }
 0x56c   : > { %v1363_v36 = vadd.f32 %v1463_v32, %v1355_v33  ;;  %v1594_v37 = vpop.f32.mrb[31].mxu0 }
 0x56e   : > { %1364 = vst [vmem:[%s339_s17] sm:$0xff] %v1363_v36 }
 0x56f PF: > { %s19_s11 = sadd.s32 1, %s1681_s11   ;;  %s2012_s30 = smov %s1677_s10 }
 0x570   : > { %p16_p5 = scmp.ge.s32.totalorder %s19_s11, 4   ;;  %s2013_s10 = smov %s2015_s12 }
 0x572   :  { %18 = sbr.rel (!%p16_p5) target bundleno = 2 (0x2), region = 107 }

</bundles_post_ra>
